<compile_context>
chip_gen: v7x
topology: tpu7x:2x2x1
jax: 0.10.0
libtpu: 0.0.40
codegen_flags: <defaults>
</compile_context>

<pallas_src>
import jax
import jax.numpy as jnp
from jax.experimental import pallas as pl
from jax.experimental.pallas import tpu as pltpu

BF16 = jnp.bfloat16


# ----------------------------------------------------------------------------
# tiling helpers
# ----------------------------------------------------------------------------
def _pick_tile(d, pref, quantum):
    """Largest tile <= pref that divides d and is a multiple of `quantum`,
    falling back to the full dimension (callers keep dims modest/aligned)."""
    if d <= pref:
        return d
    t = (min(pref, d) // quantum) * quantum
    while t >= quantum:
        if d % t == 0:
            return t
        t -= quantum
    return d


def _pick_tm(m, pref=512):
    t = _pick_tile(m, pref, 128)
    if t == m and m > pref:          # cap the full-dim fallback for large M
        t = _pick_tile(m, pref, 8)
    return t


# ----------------------------------------------------------------------------
# fused matmul kernel:  out = maybe_relu(A @ W + shift [+ residual])
# A, W are bf16 (BN scale pre-folded into W); accumulate in f32; out bf16.
# ----------------------------------------------------------------------------
def fused_matmul(a, w, shift, residual=None, use_relu=True, out_dtype=BF16):
    M, K = a.shape
    K2, Cout = w.shape
    assert K == K2
    tm = _pick_tm(M)
    tk = _pick_tile(K, 2048, 128)
    tn = _pick_tile(Cout, 512, 128)
    # keep >=2 parallel grid blocks when possible (megacore / 2-TC chips)
    if M // tm == 1 and Cout // tn == 1 and Cout % 256 == 0:
        tn = Cout // 2
    nk = K // tk
    grid = (M // tm, Cout // tn, nk)
    use_res = residual is not None

    def kernel_single(a_ref, w_ref, b_ref, *rest):
        if use_res:
            r_ref, o_ref = rest
        else:
            (o_ref,) = rest
        y = jnp.dot(a_ref[...], w_ref[...], preferred_element_type=jnp.float32)
        y = y + b_ref[...]
        if use_res:
            y = y + r_ref[...].astype(jnp.float32)
        if use_relu:
            y = jnp.maximum(y, 0.0)
        o_ref[...] = y.astype(o_ref.dtype)

    def kernel_multi(a_ref, w_ref, b_ref, *rest):
        if use_res:
            r_ref, o_ref, acc_ref = rest
        else:
            o_ref, acc_ref = rest

        @pl.when(pl.program_id(2) == 0)
        def _():
            acc_ref[...] = jnp.zeros_like(acc_ref)

        acc_ref[...] += jnp.dot(
            a_ref[...], w_ref[...], preferred_element_type=jnp.float32
        )

        @pl.when(pl.program_id(2) == nk - 1)
        def _():
            y = acc_ref[...] + b_ref[...]
            if use_res:
                y = y + r_ref[...].astype(jnp.float32)
            if use_relu:
                y = jnp.maximum(y, 0.0)
            o_ref[...] = y.astype(o_ref.dtype)

    in_specs = [
        pl.BlockSpec((tm, tk), lambda i, j, k: (i, k)),
        pl.BlockSpec((tk, tn), lambda i, j, k: (k, j)),
        pl.BlockSpec((1, tn), lambda i, j, k: (0, j)),
    ]
    args = [a, w, shift.reshape(1, Cout)]
    if use_res:
        in_specs.append(pl.BlockSpec((tm, tn), lambda i, j, k: (i, j)))
        args.append(residual)

    scratch = [] if nk == 1 else [pltpu.VMEM((tm, tn), jnp.float32)]
    kernel = kernel_single if nk == 1 else kernel_multi

    # explicit VMEM cap (important for v7x's smaller physical VMEM)
    est = 2 * (tm * tk + tk * tn + tm * tn) * 2 + 2 * tn * 4
    if use_res:
        est += 2 * tm * tn * 2
    if nk > 1:
        est += tm * tn * 4
    vmem_limit = int(min(max(32 << 20, 2 * est), 48 << 20))

    return pl.pallas_call(
        kernel,
        out_shape=jax.ShapeDtypeStruct((M, Cout), out_dtype),
        grid_spec=pltpu.PrefetchScalarGridSpec(
            num_scalar_prefetch=0,
            grid=grid,
            in_specs=in_specs,
            out_specs=pl.BlockSpec((tm, tn), lambda i, j, k: (i, j)),
            scratch_shapes=scratch,
        ),
        compiler_params=pltpu.CompilerParams(
            dimension_semantics=("parallel", "parallel", "arbitrary"),
            vmem_limit_bytes=vmem_limit,
        ),
    )(*args)


# ----------------------------------------------------------------------------
# direct 3x3 / stride-1 / pad-1 conv kernel (no HBM im2col).
# The padded plane is kept flat (rows = Hp*Wp) per image; each of the 9 taps
# is a contiguous row-slice, matmul-accumulated against its (Cin, Cout) weight
# slab.  The kernel emits a "wide" output (stride Wp between output rows);
# the wrapper crops the 2 wrap-around columns away with cheap XLA glue.
# ----------------------------------------------------------------------------
def conv3x3_s1_direct(x, w, shift, relu=True):
    N, H, W, Cin = x.shape
    kh, kw, Cin2, Cout = w.shape
    assert (kh, kw) == (3, 3) and Cin2 == Cin
    Wp = W + 2
    hw_flat = (H + 2) * Wp
    xp = jnp.pad(x, ((0, 0), (1, 1), (1, 1), (0, 0))).reshape(N, hw_flat, Cin)
    wm = w.reshape(9 * Cin, Cout)
    L = (H - 1) * Wp + W                       # wide rows actually computed
    tn = Cout if Cout <= 256 else 256
    grid = (N, Cout // tn)
    taps = [(i, j) for i in range(3) for j in range(3)]

    def kernel(x_ref, w_ref, b_ref, o_ref):
        xb = x_ref[0]                          # (hw_flat, Cin)
        acc = jnp.zeros((L, tn), jnp.float32)
        for t, (di, dj) in enumerate(taps):
            off = di * Wp + dj
            a = xb[off:off + L, :]
            wt = w_ref[t * Cin:(t + 1) * Cin, :]
            acc = acc + jnp.dot(a, wt, preferred_element_type=jnp.float32)
        y = acc + b_ref[...]
        if relu:
            y = jnp.maximum(y, 0.0)
        o_ref[0] = y.astype(o_ref.dtype)

    est = (2 * (hw_flat * Cin * 2 + 9 * Cin * tn * 2 + L * tn * 2 + tn * 4)
           + L * tn * 4 + 9 * L * Cin * 2)
    vmem_limit = int(min(max(32 << 20, 2 * est), 48 << 20))

    y_wide = pl.pallas_call(
        kernel,
        out_shape=jax.ShapeDtypeStruct((N, L, Cout), BF16),
        grid_spec=pltpu.PrefetchScalarGridSpec(
            num_scalar_prefetch=0,
            grid=grid,
            in_specs=[
                pl.BlockSpec((1, hw_flat, Cin), lambda n, j: (n, 0, 0)),
                pl.BlockSpec((9 * Cin, tn), lambda n, j: (0, j)),
                pl.BlockSpec((1, tn), lambda n, j: (0, j)),
            ],
            out_specs=pl.BlockSpec((1, L, tn), lambda n, j: (n, 0, j)),
        ),
        compiler_params=pltpu.CompilerParams(
            dimension_semantics=("parallel", "parallel"),
            vmem_limit_bytes=vmem_limit,
        ),
    )(xp, wm, shift.reshape(1, Cout))

    # crop the wide rows back to (N, H, W, Cout)
    y_wide = jnp.pad(y_wide, ((0, 0), (0, H * Wp - L), (0, 0)))
    return y_wide.reshape(N, H, Wp, Cout)[:, :, :W, :]


# ----------------------------------------------------------------------------
# stem max pool: 3x3 / stride 2 / pad 1.  The padded input is split into its
# four stride-2 phases in the wrapper (1x traffic); the kernel max-reduces the
# 9 taps via contiguous shifted slices.  No (9, M, C) stack in HBM.
# ----------------------------------------------------------------------------
def maxpool_3x3_s2(x):
    N, H, W, C = x.shape
    Ho, Wo = H // 2, W // 2
    xp = jnp.pad(x, ((0, 0), (1, 1), (1, 1), (0, 0)), constant_values=-jnp.inf)
    phases = []
    for a in (0, 1):
        for b in (0, 1):
            phases.append(xp[:, a::2, b::2, :][:, :Ho + 1, :Wo + 1, :])

    # tap (i, j) of the 3x3 window -> (phase index, row offset, col offset)
    taps = [((i % 2) * 2 + (j % 2), i // 2, j // 2)
            for i in range(3) for j in range(3)]

    def kernel(p00_ref, p01_ref, p10_ref, p11_ref, o_ref):
        ph = (p00_ref[0], p01_ref[0], p10_ref[0], p11_ref[0])
        r = None
        for (p, oi, oj) in taps:
            v = ph[p][oi:oi + Ho, oj:oj + Wo, :]
            r = v if r is None else jnp.maximum(r, v)
        o_ref[0] = r

    phase_spec = pl.BlockSpec((1, Ho + 1, Wo + 1, C), lambda n: (n, 0, 0, 0))
    return pl.pallas_call(
        kernel,
        out_shape=jax.ShapeDtypeStruct((N, Ho, Wo, C), x.dtype),
        grid_spec=pltpu.PrefetchScalarGridSpec(
            num_scalar_prefetch=0,
            grid=(N,),
            in_specs=[phase_spec] * 4,
            out_specs=pl.BlockSpec((1, Ho, Wo, C), lambda n: (n, 0, 0, 0)),
        ),
        compiler_params=pltpu.CompilerParams(
            dimension_semantics=("parallel",)),
    )(*phases)


# ----------------------------------------------------------------------------
# glue: im2col (used only for the 7x7 stem and the 3 stride-2 3x3 convs)
# ----------------------------------------------------------------------------
def im2col(x, kh, kw, stride, pad):
    N, H, W, C = x.shape
    xp = jnp.pad(x, ((0, 0), (pad, pad), (pad, pad), (0, 0)))
    Ho = (H + 2 * pad - kh) // stride + 1
    Wo = (W + 2 * pad - kw) // stride + 1
    cols = []
    for i in range(kh):
        for j in range(kw):
            cols.append(
                xp[:, i: i + stride * (Ho - 1) + 1: stride,
                      j: j + stride * (Wo - 1) + 1: stride, :]
            )
    a = jnp.concatenate(cols, axis=-1)          # (N, Ho, Wo, kh*kw*C)
    return a.reshape(N * Ho * Wo, kh * kw * C), Ho, Wo


def conv_bn(x, p, stride=1, relu=True, residual=None):
    """x: NHWC bf16.  p = {"w": bf16 (kh,kw,Cin,Cout) with BN scale folded in,
    "b": f32 (Cout,) BN shift}."""
    w, shift = p["w"], p["b"]
    kh, kw, Cin, Cout = w.shape
    N = x.shape[0]

    if kh == 3 and stride == 1 and residual is None:
        return conv3x3_s1_direct(x, w, shift, relu=relu)

    if kh == 1 and kw == 1:
        if stride > 1:
            x = x[:, ::stride, ::stride, :]
        Ho, Wo = x.shape[1], x.shape[2]
        a = x.reshape(N * Ho * Wo, Cin)
        wm = w.reshape(Cin, Cout)
    else:
        pad = kh // 2                            # 7x7 -> 3, 3x3 -> 1
        a, Ho, Wo = im2col(x, kh, kw, stride, pad)
        wm = w.reshape(kh * kw * Cin, Cout)
        K = a.shape[1]
        Kp = ((K + 127) // 128) * 128            # e.g. stem 147 -> 256 (aligned lanes)
        if Kp != K:
            a = jnp.pad(a, ((0, 0), (0, Kp - K)))
            wm = jnp.pad(wm, ((0, Kp - K), (0, 0)))

    res = None
    if residual is not None:
        res = residual.reshape(N * Ho * Wo, Cout)
    y = fused_matmul(a, wm, shift, residual=res, use_relu=relu)
    return y.reshape(N, Ho, Wo, Cout)


# ----------------------------------------------------------------------------
# deterministic synthetic parameters (ResNet-152 backbone shapes), BN folded
# ----------------------------------------------------------------------------
class ParamGen:
    def __init__(self, key):
        self.key = key

    def conv_bn(self, kh, kw, cin, cout, gain=0.2):
        self.key, kw_, kg, kb = jax.random.split(self.key, 4)
        std = gain * (2.0 / (kh * kw * cin)) ** 0.5
        w = jax.random.normal(kw_, (kh, kw, cin, cout), jnp.float32) * std
        gamma = 1.0 + 0.1 * jax.random.normal(kg, (cout,), jnp.float32)
        beta = 0.01 * jax.random.normal(kb, (cout,), jnp.float32)
        mean = jnp.zeros((cout,), jnp.float32)
        var = jnp.ones((cout,), jnp.float32)
        eps = 1e-5
        scale = gamma / jnp.sqrt(var + eps)
        shift = beta - mean * scale
        # fold eval-mode BN scale into the conv weights (constant folding)
        w = (w * scale).astype(BF16)
        return {"w": w, "b": shift.astype(jnp.float32)}


def make_bottleneck_params(pg, inplanes, planes, stride):
    p = {
        "conv1": pg.conv_bn(1, 1, inplanes, planes),
        "conv2": pg.conv_bn(3, 3, planes, planes),
        "conv3": pg.conv_bn(1, 1, planes, planes * 4),
        "stride": stride,
    }
    if stride != 1 or inplanes != planes * 4:
        p["down"] = pg.conv_bn(1, 1, inplanes, planes * 4)
    return p


def make_resnet152_params(seed=0):
    pg = ParamGen(jax.random.PRNGKey(seed))
    params = {"stem": pg.conv_bn(7, 7, 3, 64)}
    inplanes = 64
    layers_cfg = [(64, 3, 1), (128, 8, 2), (256, 36, 2), (512, 3, 2)]
    layers = []
    for planes, blocks, stride in layers_cfg:
        blks = [make_bottleneck_params(pg, inplanes, planes, stride)]
        inplanes = planes * 4
        for _ in range(blocks - 1):
            blks.append(make_bottleneck_params(pg, inplanes, planes, 1))
        layers.append(blks)
    params["layers"] = layers
    return params


# ----------------------------------------------------------------------------
# forward pass = children(resnet152)[:-2]  (conv1,bn1,relu,maxpool,layer1..4)
# ----------------------------------------------------------------------------
def bottleneck_forward(x, p):
    identity = x
    out = conv_bn(x, p["conv1"], stride=1, relu=True)
    out = conv_bn(out, p["conv2"], stride=p["stride"], relu=True)
    if "down" in p:
        identity = conv_bn(x, p["down"], stride=p["stride"], relu=False)
    # relu(bn3(conv3(out)) + identity), fused in one Pallas kernel
    return conv_bn(out, p["conv3"], stride=1, relu=True, residual=identity)


def resnet152_features(x_nchw, params):
    x = jnp.transpose(x_nchw, (0, 2, 3, 1)).astype(BF16)   # NCHW -> NHWC bf16
    x = conv_bn(x, params["stem"], stride=2, relu=True)
    x = maxpool_3x3_s2(x)
    for layer in params["layers"]:
        for blk in layer:
            x = bottleneck_forward(x, blk)
    return jnp.transpose(x, (0, 3, 1, 2)).astype(jnp.float32)  # NCHW like torch


# ----------------------------------------------------------------------------
if __name__ == "__main__":
    # Small but architecture-consistent input: 3 channels, spatial divisible
    # by 32 so the final feature map is (2048, 2, 2).
    key = jax.random.PRNGKey(0)
    x = jax.random.normal(key, (2, 3, 64, 64), jnp.float32)  # NCHW like torch

    params = make_resnet152_params(seed=0)
    feats = resnet152_features(x, params)
    feats = jax.block_until_ready(feats)

    assert feats.shape == (2, 2048, 2, 2), feats.shape
    assert bool(jnp.all(jnp.isfinite(feats)))
    print("KERNEL_OK")
</pallas_src>

<mosaic_0001>
module attributes {stable_mosaic.version = 11 : i64} {
  func.func @kernel_single(%arg0: i32, %arg1: i32, %arg2: i32, %arg3: memref<512x256xbf16, #tpu.memory_space<vmem>>, %arg4: memref<256x64xbf16, #tpu.memory_space<vmem>>, %arg5: memref<1x64xf32, #tpu.memory_space<vmem>>, %arg6: memref<512x64xbf16, #tpu.memory_space<vmem>>) attributes {dimension_semantics = [#tpu.dimension_semantics<parallel>, #tpu.dimension_semantics<parallel>, #tpu.dimension_semantics<arbitrary>], iteration_bounds = array<i64: 4, 1, 1>, scalar_prefetch = 0 : i64, scratch_operands = 0 : i64, tpu.core_type = #tpu.core_type<tc>, window_params = [{transform_indices = @transform_0, window_bounds = array<i64: 512, 256>}, {transform_indices = @transform_1, window_bounds = array<i64: 256, 64>}, {transform_indices = @transform_2, window_bounds = array<i64: 1, 64>}, {transform_indices = @transform_3, window_bounds = array<i64: 512, 64>}]} {
    %c0 = arith.constant 0 : index
    %c0_0 = arith.constant 0 : index
    %0 = vector.load %arg3[%c0, %c0_0] : memref<512x256xbf16, #tpu.memory_space<vmem>>, vector<512x256xbf16>
    %c0_1 = arith.constant 0 : index
    %c0_2 = arith.constant 0 : index
    %1 = vector.load %arg4[%c0_1, %c0_2] : memref<256x64xbf16, #tpu.memory_space<vmem>>, vector<256x64xbf16>
    %cst = arith.constant dense<0.000000e+00> : vector<512x64xf32>
    %2 = tpu.matmul %0, %1, %cst {dimension_numbers = #tpu.dot_dimension_numbers<[1], [0], [0], [1], [0, 0, 1, 1], [], []>} : vector<512x256xbf16>, vector<256x64xbf16>, vector<512x64xf32> -> vector<512x64xf32>
    %c0_3 = arith.constant 0 : index
    %c0_4 = arith.constant 0 : index
    %3 = vector.load %arg5[%c0_3, %c0_4] : memref<1x64xf32, #tpu.memory_space<vmem>>, vector<1x64xf32>
    %4 = vector.broadcast %3 : vector<1x64xf32> to vector<512x64xf32>
    %5 = arith.addf %2, %4 : vector<512x64xf32>
    %cst_5 = arith.constant 0.000000e+00 : f32
    %6 = vector.broadcast %cst_5 : f32 to vector<512x64xf32>
    %7 = arith.maximumf %5, %6 : vector<512x64xf32>
    %8 = arith.truncf %7 : vector<512x64xf32> to vector<512x64xbf16>
    %c0_6 = arith.constant 0 : index
    %c0_7 = arith.constant 0 : index
    %9 = vector.load %arg6[%c0_6, %c0_7] : memref<512x64xbf16, #tpu.memory_space<vmem>>, vector<512x64xbf16>
    tpu.vector_store %arg6[%c0_6, %c0_7], %8 {strides = array<i32>} : memref<512x64xbf16, #tpu.memory_space<vmem>>, vector<512x64xbf16>,
    return
  }
  func.func @transform_0(%arg0: i32, %arg1: i32, %arg2: i32) -> (i32, i32) {
    %c0_i32 = arith.constant 0 : i32
    return %arg0, %arg2 : i32, i32
  }
  func.func @transform_1(%arg0: i32, %arg1: i32, %arg2: i32) -> (i32, i32) {
    %c0_i32 = arith.constant 0 : i32
    return %arg2, %arg1 : i32, i32
  }
  func.func @transform_2(%arg0: i32, %arg1: i32, %arg2: i32) -> (i32, i32) {
    %c0_i32 = arith.constant 0 : i32
    %c0_i32_0 = arith.constant 0 : i32
    return %c0_i32, %arg1 : i32, i32
  }
  func.func @transform_3(%arg0: i32, %arg1: i32, %arg2: i32) -> (i32, i32) {
    %c0_i32 = arith.constant 0 : i32
    return %arg0, %arg1 : i32, i32
  }
}

</mosaic_0001>

<bundles_post_ra>
// kernel: tpu_custom_call.1
= control target key start
LH: loop header
LB: loop body
LE: loop exit
PB: predicated region body
PF: predicated region fallthrough
CT: control target
= control target key end

     0   :  { %8 = vsyncpa [#allocation3], 0  ;;  %s2592_s0 = inlined_call_operand.hbm [shape: bf16[2048,256], index: 0, kind: input, shape index: {}]   ;;  %s2593_s1 = inlined_call_operand.vmem [shape: bf16[256,64], index: 1, kind: input, shape index: {}]   ;;  %s2594_s2 = inlined_call_operand.vmem [shape: f32[1,64], index: 2, kind: input, shape index: {}]   ;;  %s2595_s3 = inlined_call_operand.vmem [shape: bf16[2048,64], index: 3, kind: output, shape index: {}]  }
   0x1   :  { %10 = vsyncpa [#allocation3 + $0x1], 0  ;;  %s2124_s12 = smov 0   ;;  %s2126_s13 = smov 0  }
   0x2   :  { %s2128_s14 = smov 0   ;;  %s2130_s15 = smov 0  }
   0x3   :  { %s2132_s16 = smov 0   ;;  %s2134_s17 = smov 0  }
   0x4 LB: > { %s1589_s18 = sadd.s32 4294967295, %s2098_s17   ;;  %s35_s19 = sadd.s32 1, %s2094_s16  ;;  %s2098_s17 = sphi %s2134_s17, %s16_s17   ;;  %s2094_s16 = sphi %s2132_s16, %s2603_s16   ;;  %s2090_s15 = sphi %s2130_s15, %s2602_s15   ;;  %s2086_s14 = sphi %s2128_s14, %s2601_s14   ;;  %s2082_s13 = sphi %s2126_s13, %s2600_s13   ;;  %s2078_s12 = sphi %s2124_s12, %s2599_s12  }
   0x5   : > { %p37_p0 = scmp.ge.s32.totalorder %s35_s19, 4  ;;  %s44_s20 = sadd.s32 1, %s2086_s14 }
   0x6   : > { %p51_p1 = scmp.ne.s32.totalorder %s2086_s14, %s2082_s13  ;;  %p52_p2 = scmp.eq.s32.totalorder %s2098_s17, 0 }
   0x7   : > { %s2605_s19 = smov (%p37_p0, %s35_s19), 0  ;;  %p57_p4 = scmp.ne.s32.totalorder %s2082_s13, %s2078_s12 }
   0x8   : > { %p2160_p3 = por %p52_p2, %p51_p1  ;;  %s39_s22 = ssub.s32 %s2094_s16, %s2605_s19 }
   0x9   : > { %p58_p5 = scmp.eq.s32.totalorder %s1589_s18, 0  ;;  %p42_p6 = scmp.eq.s32.totalorder %s39_s22, 0 }
   0xa   : > { %p1854_p8 = scmp.lt.s32.totalorder %s2098_s17, 4  ;;  %s181_s25 = sand.u32 1, %s2086_s14  }
   0xb   : > { %p2167_p7 = por %p58_p5, %p57_p4  ;;  %s1751_s26 = sshll.u32 %s2094_s16, 13 }
   0xc   : > { %s2173_s24 = scalar_select %p42_p6, %s2086_s14, %s44_s20  }
   0xd   : > { %s1595_s27 = sshll.u32 %s181_s25, 9  ;;  %s2180_s30 = scalar_lea.hbm %s2592_s0, %s1751_s26 }
   0xe   : > { %s185_s4 = scalar_lea.vmem [#allocation2], %s1595_s27  ;;  %p2184_p9 = pnand %p1854_p8, %p2160_p3 }
   0xf   : > { %s195_s5 = sshll.u32 %s185_s4, 4  ;;  %s2190_s7 = scalar_lea.sflag [#allocation3], %s181_s25  ;;  %s2188_s5 = int_to_ptr.vmem [resolvable:$true] %s195_s5 }
  0x10   : > { %s2018_s8 = scalar_lea.hbm %s2180_s30, 8192  ;;  %p2020_p11 = pneg %p2184_p9 }
  0x11   : > { %p2019_p10 = scmp.ne.s32.totalorder %s2180_s30, %s2018_s8  ;;  %s2023_s11 = scalar_lea.hbm %s2592_s0, 32768 }
  0x12   : > { %p2024_p0 = scmp.lt.u32.totalorder %s2180_s30, %s2592_s0  ;;  %p2025_p1 = scmp.lt.u32.totalorder %s2023_s11, %s2018_s8 }
  0x13   : > { %p2021_p12 = pnand %p2020_p11, %p2019_p10  ;;  %p2027_p3 = scmp.lt.u32.totalorder %s2018_s8, %s2180_s30 }
  0x14   : > { %p2026_p2 = por %p2025_p1, %p2024_p0 }
  0x15   : > { %p2022_p13 = pneg %p2021_p12 }
  0x16   : > { %p2028_p4 = por %p2027_p3, %p2026_p2 }
  0x18   : > { %p2029_p5 = pnand %p2028_p4, %p2022_p13 }
  0x1a   : > { %2032 = shalt.err (!%p2029_p5)
}
  0x1b   : > { %s2033_s20 = scalar_lea.vmem %s2188_s5, 8192  ;;  %s2100_s21 = smov [#allocation2]  }
  0x1c   : > { %p2034_p6 = scmp.ne.s32.totalorder %s2188_s5, %s2033_s20  ;;  %s2038_s22 = sshll.u32 %s2100_s21, 4  ;;  %s2039_s22 = int_to_ptr.vmem [resolvable:$false] %s2038_s22 }
  0x1d   : > { %s2040_s25 = scalar_lea.vmem %s2039_s22, 16384  ;;  %p2041_p12 = scmp.lt.s32.totalorder %s2188_s5, %s2039_s22 }
  0x1e   : > { %p2036_p8 = pnand %p2034_p6, %p2020_p11  ;;  %p2042_p0 = scmp.lt.s32.totalorder %s2040_s25, %s2033_s20 }
  0x20   : > { %p2037_p10 = pneg %p2036_p8  ;;  %p2043_p1 = por %p2042_p0, %p2041_p12 }
  0x22   : > { %p2044_p2 = pnand %p2043_p1, %p2037_p10 }
  0x24   : > { %2047 = shalt.err (!%p2044_p2)
}
  0x25   : > { %s2101_s26 = smov 128   ;;  %s2102_s27 = smov 8  }
  0x26   : > { %1853 = dma.hbm_to_vmem [thread:$0]  (!%p2184_p9), %s2180_s30, 8192, %s2188_s5, %s2190_s7, %s2101_s26, %s2101_s26, %s2102_s27  }
  0x27   : > { %p1599_p11 = scmp.ge.s32.totalorder %s2098_s17, 1  ;;  %p203_p13 = scmp.lt.s32.totalorder %s2098_s17, 5 }
  0x29   : > { %p204_p3 = pnand %p1599_p11, %p203_p13 }
  0x2a   : > { %s209_s28 = sand.u32 (!%p204_p3), 1, %s2082_s13  }
  0x2b   : > { %207 = sbr.rel (%p204_p3) target bundleno = 457 (0x1c9), region = 32  ;;  %s1600_s29 = sshll.u32 (!%p204_p3), %s209_s28, 9 }
  0x2c   : > { %s210_s4 = scalar_lea.sflag (!%p204_p3), [#allocation3], %s209_s28  ;;  %s2221_s8 = scalar_lea.vmem (!%p204_p3), [#allocation2], %s1600_s29 }
  0x32   : > { %2073 = dma.done.wait (%p2167_p7), %s210_s4, 8192  }
  0x33   : > { %2075 = vsyncadd (%p2167_p7), %s210_s4, 4294959104  ;;  %v2103_v0 = vmov 0   ;;  %v1906_v1 = vld [vmem:[%s2593_s1] sm:$0xff]   ;;  %v1907_v2 = vld [vmem:[%s2593_s1 + $0x8] sm:$0xff]   ;;  %s1601_s25 = sshll.u32 %s2090_s15, 6  ;;  %vm1402_vm0 = vcmask 519168  }
  0x34   : > { %793 = vmatprep.subr.bf16.mxu0 %v2103_v0  ;;  %1816 = vmatprep.subr.bf16.mxu1 %v2103_v0  ;;  %v1908_v3 = vld [vmem:[%s2593_s1 + $0x10] sm:$0xff]   ;;  %v1909_v4 = vld [vmem:[%s2593_s1 + $0x18] sm:$0xff]   ;;  %v1910_v5 = vld [vmem:[%s2593_s1 + $0x20] sm:$0xff]   ;;  %p265_p7 = scmp.lt.s32.totalorder %s1601_s25, 255 }
  0x35   : > { %794 = vmatpush1.bf16.msra.mxu0 %v1906_v1  ;;  %1832 = vmatpush1.bf16.msra.mxu1 %v1906_v1  ;;  %v1924_v6 = vld [vmem:[%s2221_s8 + $0x4] ss:$8 sps:$4 sm:$0xff]   ;;  %v1912_v9 = vld [vmem:[%s2593_s1 + $0x30] sm:$0xff]   ;;  %v1913_v10 = vld [vmem:[%s2593_s1 + $0x38] sm:$0xff]  }
  0x36   : > { %795 = vmatprep.subr.bf16.mxu0 %v2103_v0  ;;  %1817 = vmatprep.subr.bf16.mxu1 %v2103_v0  ;;  %v1911_v7 = vld [vmem:[%s2593_s1 + $0x28] sm:$0xff]   ;;  %v1914_v11 = vld [vmem:[%s2593_s1 + $0x40] sm:$0xff]   ;;  %v1916_v13 = vld [vmem:[%s2593_s1 + $0x50] sm:$0xff]   ;;  %s2607_s25 = smov (!%p265_p7, %s1601_s25), 255 }
  0x37   : > { %v1927_v8 = vld [vmem:[%s2221_s8 + $0x104] ss:$8 sps:$4 sm:$0xff]   ;;  %825 = vmatprep.mubr.bf16.mxu0 %v1924_v6  ;;  %v1917_v14 = vld [vmem:[%s2593_s1 + $0x58] sm:$0xff]   ;;  %v1920_v17 = vld [vmem:[%s2593_s1 + $0x70] sm:$0xff]   ;;  %s1602_s28 = sshll.u32 %s2607_s25, 2 }
  0x38   : > { %953 = vmatprep.mubr.bf16.mxu1 %v1927_v8  ;;  %v1915_v12 = vld [vmem:[%s2593_s1 + $0x48] sm:$0xff]   ;;  %v1918_v15 = vld [vmem:[%s2593_s1 + $0x60] sm:$0xff]   ;;  %v1921_v18 = vld [vmem:[%s2593_s1 + $0x78] sm:$0xff]   ;;  %s2384_s29 = scalar_lea.vmem %s2595_s3, %s1602_s28 }
  0x39   : > { %796 = vmatpush1.bf16.msra.mxu0 %v1907_v2  ;;  %1833 = vmatpush1.bf16.msra.mxu1 %v1907_v2  ;;  %v1919_v16 = vld [vmem:[%s2593_s1 + $0x68] sm:$0xff]   ;;  %v1928_v21 = vld [vmem:[%s2221_s8 + $0x14] ss:$8 sps:$4 sm:$0xff]   ;;  %v1932_v23 = vld [vmem:[%s2221_s8 + $0x10] ss:$8 sps:$4 sm:$0xff]  }
  0x3a   : > { %797 = vmatprep.subr.bf16.mxu0 %v2103_v0  ;;  %1818 = vmatprep.subr.bf16.mxu1 %v2103_v0  ;;  %v1922_v19 = vld [vmem:[%s2221_s8] ss:$8 sps:$4 sm:$0xff]   ;;  %v1930_v22 = vld [vmem:[%s2221_s8 + $0x114] ss:$8 sps:$4 sm:$0xff]   ;;  %v1933_v24 = vld [vmem:[%s2221_s8 + $0x110] ss:$8 sps:$4 sm:$0xff]  }
  0x3b   : > { %v1925_v20 = vld [vmem:[%s2221_s8 + $0x100] ss:$8 sps:$4 sm:$0xff]   ;;  %v1934_v25 = vld [vmem:[%s2221_s8 + $0x24] ss:$8 sps:$4 sm:$0xff]   ;;  %v1940_v29 = vld [vmem:[%s2221_s8 + $0x34] ss:$8 sps:$4 sm:$0xff]  }
  0x3c   : > { %v1936_v26 = vld [vmem:[%s2221_s8 + $0x124] ss:$8 sps:$4 sm:$0xff]   ;;  %v1938_v27 = vld [vmem:[%s2221_s8 + $0x20] ss:$8 sps:$4 sm:$0xff]   ;;  %v1942_v30 = vld [vmem:[%s2221_s8 + $0x134] ss:$8 sps:$4 sm:$0xff]  }
  0x3d   : > { %798 = vmatpush1.bf16.msra.mxu0 %v1908_v3  ;;  %1834 = vmatpush1.bf16.msra.mxu1 %v1908_v3  ;;  %v1939_v28 = vld [vmem:[%s2221_s8 + $0x120] ss:$8 sps:$4 sm:$0xff]   ;;  %v1944_v31 = vld [vmem:[%s2221_s8 + $0x30] ss:$8 sps:$4 sm:$0xff]   ;;  %v1946_v33 = vld [vmem:[%s2221_s8 + $0x44] ss:$8 sps:$4 sm:$0xff]  }
  0x3e   : > { %799 = vmatprep.subr.bf16.mxu0 %v2103_v0  ;;  %1819 = vmatprep.subr.bf16.mxu1 %v2103_v0  ;;  %v1945_v32 = vld [vmem:[%s2221_s8 + $0x130] ss:$8 sps:$4 sm:$0xff]   ;;  %v1948_v34 = vld [vmem:[%s2221_s8 + $0x144] ss:$8 sps:$4 sm:$0xff]   ;;  %v1950_v35 = vld [vmem:[%s2221_s8 + $0x40] ss:$8 sps:$4 sm:$0xff]  }
  0x3f   : > { %v1951_v36 = vld [vmem:[%s2221_s8 + $0x140] ss:$8 sps:$4 sm:$0xff]   ;;  %v1952_v37 = vld [vmem:[%s2221_s8 + $0x54] ss:$8 sps:$4 sm:$0xff]   ;;  %v1956_v39 = vld [vmem:[%s2221_s8 + $0x50] ss:$8 sps:$4 sm:$0xff]  }
  0x40   : > { %v1954_v38 = vld [vmem:[%s2221_s8 + $0x154] ss:$8 sps:$4 sm:$0xff]   ;;  %v1957_v40 = vld [vmem:[%s2221_s8 + $0x150] ss:$8 sps:$4 sm:$0xff]   ;;  %v1958_v41 = vld [vmem:[%s2221_s8 + $0x64] ss:$8 sps:$4 sm:$0xff]  }
  0x41   : > { %800 = vmatpush1.bf16.msra.mxu0 %v1909_v4  ;;  %1835 = vmatpush1.bf16.msra.mxu1 %v1909_v4  ;;  %v1960_v42 = vld [vmem:[%s2221_s8 + $0x164] ss:$8 sps:$4 sm:$0xff]   ;;  %v1962_v43 = vld [vmem:[%s2221_s8 + $0x60] ss:$8 sps:$4 sm:$0xff]   ;;  %v1964_v45 = vld [vmem:[%s2221_s8 + $0x74] ss:$8 sps:$4 sm:$0xff]  }
  0x42   : > { %801 = vmatprep.subr.bf16.mxu0 %v2103_v0  ;;  %1820 = vmatprep.subr.bf16.mxu1 %v2103_v0  ;;  %v1963_v44 = vld [vmem:[%s2221_s8 + $0x160] ss:$8 sps:$4 sm:$0xff]   ;;  %v1966_v46 = vld [vmem:[%s2221_s8 + $0x174] ss:$8 sps:$4 sm:$0xff]   ;;  %v1968_v47 = vld [vmem:[%s2221_s8 + $0x70] ss:$8 sps:$4 sm:$0xff]  }
  0x43   : > { %v1969_v48 = vld [vmem:[%s2221_s8 + $0x170] ss:$8 sps:$4 sm:$0xff]   ;;  %v1970_v49 = vld [vmem:[%s2221_s8 + $0x84] ss:$8 sps:$4 sm:$0xff]   ;;  %v1974_v51 = vld [vmem:[%s2221_s8 + $0x80] ss:$8 sps:$4 sm:$0xff]  }
  0x44   : > { %v1972_v50 = vld [vmem:[%s2221_s8 + $0x184] ss:$8 sps:$4 sm:$0xff]   ;;  %v1975_v52 = vld [vmem:[%s2221_s8 + $0x180] ss:$8 sps:$4 sm:$0xff]   ;;  %v1976_v53 = vld [vmem:[%s2221_s8 + $0x94] ss:$8 sps:$4 sm:$0xff]  }
  0x45   : > { %802 = vmatpush1.bf16.msra.mxu0 %v1910_v5  ;;  %1836 = vmatpush1.bf16.msra.mxu1 %v1910_v5  ;;  %v1978_v54 = vld [vmem:[%s2221_s8 + $0x194] ss:$8 sps:$4 sm:$0xff]   ;;  %v1980_v55 = vld [vmem:[%s2221_s8 + $0x90] ss:$8 sps:$4 sm:$0xff]   ;;  %v1982_v57 = vld [vmem:[%s2221_s8 + $0xa4] ss:$8 sps:$4 sm:$0xff]  }
  0x46   : > { %803 = vmatprep.subr.bf16.mxu0 %v2103_v0  ;;  %1821 = vmatprep.subr.bf16.mxu1 %v2103_v0  ;;  %v1981_v56 = vld [vmem:[%s2221_s8 + $0x190] ss:$8 sps:$4 sm:$0xff]   ;;  %v1984_v58 = vld [vmem:[%s2221_s8 + $0x1a4] ss:$8 sps:$4 sm:$0xff]   ;;  %v1986_v59 = vld [vmem:[%s2221_s8 + $0xa0] ss:$8 sps:$4 sm:$0xff]  }
  0x47   : > { %v1987_v60 = vld [vmem:[%s2221_s8 + $0x1a0] ss:$8 sps:$4 sm:$0xff]   ;;  %v1988_v61 = vld [vmem:[%s2221_s8 + $0xb4] ss:$8 sps:$4 sm:$0xff]   ;;  %v1992_v63 = vld [vmem:[%s2221_s8 + $0xb0] ss:$8 sps:$4 sm:$0xff]  }
  0x48   : > { %v1990_v62 = vld [vmem:[%s2221_s8 + $0x1b4] ss:$8 sps:$4 sm:$0xff]   ;;  %v1994_v1 = vld [vmem:[%s2221_s8 + $0xc4] ss:$8 sps:$4 sm:$0xff]   ;;  %v1998_v3 = vld [vmem:[%s2221_s8 + $0xc0] ss:$8 sps:$4 sm:$0xff]  }
  0x49   : > { %804 = vmatpush1.bf16.msra.mxu0 %v1911_v7  ;;  %1837 = vmatpush1.bf16.msra.mxu1 %v1911_v7  ;;  %v1996_v2 = vld [vmem:[%s2221_s8 + $0x1c4] ss:$8 sps:$4 sm:$0xff]   ;;  %v1999_v4 = vld [vmem:[%s2221_s8 + $0x1c0] ss:$8 sps:$4 sm:$0xff]   ;;  %v2000_v5 = vld [vmem:[%s2221_s8 + $0xd4] ss:$8 sps:$4 sm:$0xff]  }
  0x4a   : > { %805 = vmatprep.subr.bf16.mxu0 %v2103_v0  ;;  %1822 = vmatprep.subr.bf16.mxu1 %v2103_v0  ;;  %v2002_v6 = vld [vmem:[%s2221_s8 + $0x1d4] ss:$8 sps:$4 sm:$0xff]   ;;  %v2004_v7 = vld [vmem:[%s2221_s8 + $0xd0] ss:$8 sps:$4 sm:$0xff]  }
  0x4b   : > { %v2005_v8 = vld [vmem:[%s2221_s8 + $0x1d0] ss:$8 sps:$4 sm:$0xff]  }
  0x4d   : > { %806 = vmatpush1.bf16.msra.mxu0 %v1912_v9  ;;  %1838 = vmatpush1.bf16.msra.mxu1 %v1912_v9  ;;  %v2006_v9 = vld [vmem:[%s2221_s8 + $0xe4] ss:$8 sps:$4 sm:$0xff]  }
  0x4e   : > { %807 = vmatprep.subr.bf16.mxu0 %v2103_v0  ;;  %1823 = vmatprep.subr.bf16.mxu1 %v2103_v0 }
  0x51   : > { %808 = vmatpush1.bf16.msra.mxu0 %v1913_v10  ;;  %1839 = vmatpush1.bf16.msra.mxu1 %v1913_v10  ;;  %v2008_v10 = vld [vmem:[%s2221_s8 + $0x1e4] ss:$8 sps:$4 sm:$0xff]  }
  0x52   : > { %809 = vmatprep.subr.bf16.mxu0 %v2103_v0  ;;  %1824 = vmatprep.subr.bf16.mxu1 %v2103_v0 }
  0x55   : > { %810 = vmatpush1.bf16.msra.mxu0 %v1914_v11  ;;  %1840 = vmatpush1.bf16.msra.mxu1 %v1914_v11  ;;  %v2010_v11 = vld [vmem:[%s2221_s8 + $0xe0] ss:$8 sps:$4 sm:$0xff]  }
  0x56   : > { %811 = vmatprep.subr.bf16.mxu0 %v2103_v0  ;;  %1825 = vmatprep.subr.bf16.mxu1 %v2103_v0 }
  0x59   : > { %812 = vmatpush1.bf16.msra.mxu0 %v1915_v12  ;;  %1841 = vmatpush1.bf16.msra.mxu1 %v1915_v12  ;;  %v2011_v12 = vld [vmem:[%s2221_s8 + $0x1e0] ss:$8 sps:$4 sm:$0xff]  }
  0x5a   : > { %813 = vmatprep.subr.bf16.mxu0 %v2103_v0  ;;  %1826 = vmatprep.subr.bf16.mxu1 %v2103_v0 }
  0x5d   : > { %814 = vmatpush1.bf16.msra.mxu0 %v1916_v13  ;;  %1842 = vmatpush1.bf16.msra.mxu1 %v1916_v13  ;;  %v2012_v13 = vld [vmem:[%s2221_s8 + $0xf4] ss:$8 sps:$4 sm:$0xff]  }
  0x5e   : > { %815 = vmatprep.subr.bf16.mxu0 %v2103_v0  ;;  %1827 = vmatprep.subr.bf16.mxu1 %v2103_v0 }
  0x61   : > { %816 = vmatpush1.bf16.msra.mxu0 %v1917_v14  ;;  %1843 = vmatpush1.bf16.msra.mxu1 %v1917_v14  ;;  %v2014_v14 = vld [vmem:[%s2221_s8 + $0x1f4] ss:$8 sps:$4 sm:$0xff]  }
  0x62   : > { %817 = vmatprep.subr.bf16.mxu0 %v2103_v0  ;;  %1828 = vmatprep.subr.bf16.mxu1 %v2103_v0 }
  0x65   : > { %818 = vmatpush1.bf16.msra.mxu0 %v1918_v15  ;;  %1844 = vmatpush1.bf16.msra.mxu1 %v1918_v15  ;;  %v2016_v15 = vld [vmem:[%s2221_s8 + $0xf0] ss:$8 sps:$4 sm:$0xff]  }
  0x66   : > { %819 = vmatprep.subr.bf16.mxu0 %v2103_v0  ;;  %1829 = vmatprep.subr.bf16.mxu1 %v2103_v0 }
  0x69   : > { %820 = vmatpush1.bf16.msra.mxu0 %v1919_v16  ;;  %1845 = vmatpush1.bf16.msra.mxu1 %v1919_v16  ;;  %v2017_v16 = vld [vmem:[%s2221_s8 + $0x1f0] ss:$8 sps:$4 sm:$0xff]  }
  0x6a   : > { %821 = vmatprep.subr.bf16.mxu0 %v2103_v0  ;;  %1830 = vmatprep.subr.bf16.mxu1 %v2103_v0 }
  0x6d   : > { %822 = vmatpush1.bf16.msra.mxu0 %v1920_v17  ;;  %1846 = vmatpush1.bf16.msra.mxu1 %v1920_v17  ;;  %v2375_v17 = vld [vmem:[%s2594_s2] ss:$0 sm:$0xff] }
  0x6e   : > { %823 = vmatprep.subr.bf16.mxu0 %v2103_v0  ;;  %1831 = vmatprep.subr.bf16.mxu1 %v2103_v0  ;;  %v1993_v0 = vld [vmem:[%s2221_s8 + $0x1b0] ss:$8 sps:$4 sm:$0xff]  }
  0x71   : > { %824 = vmatpush1.bf16.msra.mxu0 %v1921_v18  ;;  %1847 = vmatpush1.bf16.msra.mxu1 %v1921_v18 }
  0x74   : > { %826 = vmatmul.mubr.bf16.vlgmr.msra.gmra.mrb[0].mxu0 %v1922_v19  ;;  %954 = vmatmul.mubr.bf16.vlgmr.msra.gmra.mrb[0].mxu1 %v1925_v20 }
  0x75   : > { %833 = vmatprep.mubr.bf16.mxu0 %v1928_v21  ;;  %961 = vmatprep.mubr.bf16.mxu1 %v1930_v22 }
  0x7c   : > { %834 = vmatmul.mubr.bf16.gmra.mrb[4].mxu0 %v1932_v23  ;;  %962 = vmatmul.mubr.bf16.gmra.mrb[4].mxu1 %v1933_v24 }
  0x7d   : > { %841 = vmatprep.mubr.bf16.mxu0 %v1934_v25  ;;  %969 = vmatprep.mubr.bf16.mxu1 %v1936_v26 }
  0x84   : > { %842 = vmatmul.mubr.bf16.gmra.mrb[8].mxu0 %v1938_v27  ;;  %970 = vmatmul.mubr.bf16.gmra.mrb[8].mxu1 %v1939_v28 }
  0x85   : > { %849 = vmatprep.mubr.bf16.mxu0 %v1940_v29  ;;  %977 = vmatprep.mubr.bf16.mxu1 %v1942_v30 }
  0x8c   : > { %850 = vmatmul.mubr.bf16.gmra.mrb[12].mxu0 %v1944_v31  ;;  %978 = vmatmul.mubr.bf16.gmra.mrb[12].mxu1 %v1945_v32 }
  0x8d   : > { %857 = vmatprep.mubr.bf16.mxu0 %v1946_v33  ;;  %985 = vmatprep.mubr.bf16.mxu1 %v1948_v34 }
  0x94   : > { %858 = vmatmul.mubr.bf16.gmra.mrb[16].mxu0 %v1950_v35  ;;  %986 = vmatmul.mubr.bf16.gmra.mrb[16].mxu1 %v1951_v36 }
  0x95   : > { %865 = vmatprep.mubr.bf16.mxu0 %v1952_v37  ;;  %993 = vmatprep.mubr.bf16.mxu1 %v1954_v38 }
  0x9c   : > { %866 = vmatmul.mubr.bf16.gmra.mrb[20].mxu0 %v1956_v39  ;;  %994 = vmatmul.mubr.bf16.gmra.mrb[20].mxu1 %v1957_v40 }
  0x9d   : > { %873 = vmatprep.mubr.bf16.mxu0 %v1958_v41  ;;  %1001 = vmatprep.mubr.bf16.mxu1 %v1960_v42 }
  0xa4   : > { %874 = vmatmul.mubr.bf16.gmra.mrb[24].mxu0 %v1962_v43  ;;  %1002 = vmatmul.mubr.bf16.gmra.mrb[24].mxu1 %v1963_v44 }
  0xa5   : > { %881 = vmatprep.mubr.bf16.mxu0 %v1964_v45  ;;  %1009 = vmatprep.mubr.bf16.mxu1 %v1966_v46 }
  0xac   : > { %882 = vmatmul.mubr.bf16.gmra.mrb[28].mxu0 %v1968_v47  ;;  %1010 = vmatmul.mubr.bf16.gmra.mrb[28].mxu1 %v1969_v48 }
  0xad   : > { %889 = vmatprep.mubr.bf16.mxu0 %v1970_v49  ;;  %1017 = vmatprep.mubr.bf16.mxu1 %v1972_v50 }
  0xb4   : > { %890 = vmatmul.mubr.bf16.gmra.mrb[32].mxu0 %v1974_v51  ;;  %1018 = vmatmul.mubr.bf16.gmra.mrb[32].mxu1 %v1975_v52 }
  0xb5   : > { %897 = vmatprep.mubr.bf16.mxu0 %v1976_v53  ;;  %1025 = vmatprep.mubr.bf16.mxu1 %v1978_v54 }
  0xbc   : > { %898 = vmatmul.mubr.bf16.gmra.mrb[36].mxu0 %v1980_v55  ;;  %1026 = vmatmul.mubr.bf16.gmra.mrb[36].mxu1 %v1981_v56 }
  0xbd   : > { %905 = vmatprep.mubr.bf16.mxu0 %v1982_v57  ;;  %1033 = vmatprep.mubr.bf16.mxu1 %v1984_v58 }
  0xc4   : > { %906 = vmatmul.mubr.bf16.gmra.mrb[40].mxu0 %v1986_v59  ;;  %1034 = vmatmul.mubr.bf16.gmra.mrb[40].mxu1 %v1987_v60 }
  0xc5   : > { %913 = vmatprep.mubr.bf16.mxu0 %v1988_v61  ;;  %1041 = vmatprep.mubr.bf16.mxu1 %v1990_v62 }
  0xcc   : > { %914 = vmatmul.mubr.bf16.gmra.mrb[44].mxu0 %v1992_v63  ;;  %1042 = vmatmul.mubr.bf16.gmra.mrb[44].mxu1 %v1993_v0 }
  0xcd   : > { %921 = vmatprep.mubr.bf16.mxu0 %v1994_v1  ;;  %1049 = vmatprep.mubr.bf16.mxu1 %v1996_v2 }
  0xd4   : > { %922 = vmatmul.mubr.bf16.gmra.mrb[48].mxu0 %v1998_v3  ;;  %1050 = vmatmul.mubr.bf16.gmra.mrb[48].mxu1 %v1999_v4 }
  0xd5   : > { %929 = vmatprep.mubr.bf16.mxu0 %v2000_v5  ;;  %1057 = vmatprep.mubr.bf16.mxu1 %v2002_v6 }
  0xdc   : > { %930 = vmatmul.mubr.bf16.gmra.mrb[52].mxu0 %v2004_v7  ;;  %1058 = vmatmul.mubr.bf16.gmra.mrb[52].mxu1 %v2005_v8 }
  0xdd   : > { %937 = vmatprep.mubr.bf16.mxu0 %v2006_v9  ;;  %1065 = vmatprep.mubr.bf16.mxu1 %v2008_v10 }
  0xe4   : > { %938 = vmatmul.mubr.bf16.gmra.mrb[56].mxu0 %v2010_v11  ;;  %1066 = vmatmul.mubr.bf16.gmra.mrb[56].mxu1 %v2011_v12 }
  0xe5   : > { %945 = vmatprep.mubr.bf16.mxu0 %v2012_v13  ;;  %1073 = vmatprep.mubr.bf16.mxu1 %v2014_v14 }
  0xec   : > { %946 = vmatmul.mubr.bf16.gmra.mrb[60].mxu0 %v2016_v15  ;;  %1074 = vmatmul.mubr.bf16.gmra.mrb[60].mxu1 %v2017_v16 }
 0x147   : > { %v827_v18 = vpop.f32.mrb[0].mxu0  ;;  %v955_v19 = vpop.f32.mrb[0].mxu1 }
 0x148   : > { %v828_v20 = vadd.f32 %v2375_v17, %v827_v18  ;;  %v956_v21 = vadd.f32 %v2375_v17, %v955_v19  ;;  %v829_v22 = vpop.f32.mrb[1].mxu0  ;;  %v957_v23 = vpop.f32.mrb[1].mxu1 }
 0x149   : > { %v830_v24 = vpop.f32.mrb[2].mxu0  ;;  %v958_v25 = vpop.f32.mrb[2].mxu1 }
 0x14a   : > { %v1082_v26 = vmax.f32 %v828_v20, 0.0  ;;  %v1114_v27 = vmax.f32 %v956_v21, 0.0  ;;  %v831_v28 = vadd.f32 %v2375_v17, %v830_v24  ;;  %v959_v29 = vadd.f32 %v2375_v17, %v958_v25  ;;  %v832_v30 = vpop.f32.mrb[3].mxu0  ;;  %v960_v31 = vpop.f32.mrb[3].mxu1 }
 0x14c   : > { %v1752_v32 = vpack.c.bf16 %v1082_v26, %v1082_v26  ;;  %v1784_v33 = vpack.c.bf16 %v1114_v27, %v1114_v27  ;;  %v1083_v34 = vmax.f32 %v831_v28, 0.0  ;;  %v1115_v35 = vmax.f32 %v959_v29, 0.0 }
 0x14e   : > { %1403 = vst.msk [vmem:[%s2384_s29] sm:$0xf] %vm1402_vm0, %v1752_v32  ;;  %1435 = vst.msk [vmem:[%s2384_s29 + $0x80] sm:$0xf] %vm1402_vm0, %v1784_v33  ;;  %v1753_v36 = vpack.c.bf16 %v1083_v34, %v1083_v34  ;;  %v1785_v37 = vpack.c.bf16 %v1115_v35, %v1115_v35 }
 0x14f   : > { %v835_v38 = vpop.f32.mrb[4].mxu0  ;;  %v963_v39 = vpop.f32.mrb[4].mxu1 }
 0x150   : > { %1404 = vst.msk [vmem:[%s2384_s29 + $0x4] sm:$0xf] %vm1402_vm0, %v1753_v36  ;;  %1436 = vst.msk [vmem:[%s2384_s29 + $0x84] sm:$0xf] %vm1402_vm0, %v1785_v37  ;;  %v836_v40 = vadd.f32 %v2375_v17, %v835_v38  ;;  %v964_v41 = vadd.f32 %v2375_v17, %v963_v39  ;;  %v837_v42 = vpop.f32.mrb[5].mxu0  ;;  %v965_v43 = vpop.f32.mrb[5].mxu1 }
 0x151   : > { %v838_v44 = vpop.f32.mrb[6].mxu0  ;;  %v966_v45 = vpop.f32.mrb[6].mxu1 }
 0x152   : > { %v1084_v46 = vmax.f32 %v836_v40, 0.0  ;;  %v1116_v47 = vmax.f32 %v964_v41, 0.0  ;;  %v839_v48 = vadd.f32 %v2375_v17, %v838_v44  ;;  %v967_v49 = vadd.f32 %v2375_v17, %v966_v45  ;;  %v840_v50 = vpop.f32.mrb[7].mxu0  ;;  %v968_v51 = vpop.f32.mrb[7].mxu1 }
 0x154   : > { %v1754_v52 = vpack.c.bf16 %v1084_v46, %v1084_v46  ;;  %v1786_v53 = vpack.c.bf16 %v1116_v47, %v1116_v47  ;;  %v1085_v54 = vmax.f32 %v839_v48, 0.0  ;;  %v1117_v55 = vmax.f32 %v967_v49, 0.0 }
 0x156   : > { %1405 = vst.msk [vmem:[%s2384_s29 + $0x8] sm:$0xf] %vm1402_vm0, %v1754_v52  ;;  %1437 = vst.msk [vmem:[%s2384_s29 + $0x88] sm:$0xf] %vm1402_vm0, %v1786_v53  ;;  %v1755_v56 = vpack.c.bf16 %v1085_v54, %v1085_v54  ;;  %v1787_v57 = vpack.c.bf16 %v1117_v55, %v1117_v55 }
 0x157   : > { %v843_v58 = vpop.f32.mrb[8].mxu0  ;;  %v971_v59 = vpop.f32.mrb[8].mxu1 }
 0x158   : > { %1406 = vst.msk [vmem:[%s2384_s29 + $0xc] sm:$0xf] %vm1402_vm0, %v1755_v56  ;;  %1438 = vst.msk [vmem:[%s2384_s29 + $0x8c] sm:$0xf] %vm1402_vm0, %v1787_v57  ;;  %v844_v60 = vadd.f32 %v2375_v17, %v843_v58  ;;  %v972_v61 = vadd.f32 %v2375_v17, %v971_v59  ;;  %v845_v62 = vpop.f32.mrb[9].mxu0  ;;  %v973_v63 = vpop.f32.mrb[9].mxu1 }
 0x159   : > { %v846_v0 = vpop.f32.mrb[10].mxu0  ;;  %v974_v1 = vpop.f32.mrb[10].mxu1 }
 0x15a   : > { %v1086_v2 = vmax.f32 %v844_v60, 0.0  ;;  %v1118_v3 = vmax.f32 %v972_v61, 0.0  ;;  %v847_v4 = vadd.f32 %v2375_v17, %v846_v0  ;;  %v975_v5 = vadd.f32 %v2375_v17, %v974_v1  ;;  %v848_v6 = vpop.f32.mrb[11].mxu0  ;;  %v976_v7 = vpop.f32.mrb[11].mxu1 }
 0x15c   : > { %v1756_v8 = vpack.c.bf16 %v1086_v2, %v1086_v2  ;;  %v1788_v9 = vpack.c.bf16 %v1118_v3, %v1118_v3  ;;  %v1087_v10 = vmax.f32 %v847_v4, 0.0  ;;  %v1119_v11 = vmax.f32 %v975_v5, 0.0 }
 0x15e   : > { %1407 = vst.msk [vmem:[%s2384_s29 + $0x10] sm:$0xf] %vm1402_vm0, %v1756_v8  ;;  %1439 = vst.msk [vmem:[%s2384_s29 + $0x90] sm:$0xf] %vm1402_vm0, %v1788_v9  ;;  %v1757_v12 = vpack.c.bf16 %v1087_v10, %v1087_v10  ;;  %v1789_v13 = vpack.c.bf16 %v1119_v11, %v1119_v11 }
 0x15f   : > { %v851_v14 = vpop.f32.mrb[12].mxu0  ;;  %v979_v15 = vpop.f32.mrb[12].mxu1 }
 0x160   : > { %1408 = vst.msk [vmem:[%s2384_s29 + $0x14] sm:$0xf] %vm1402_vm0, %v1757_v12  ;;  %1440 = vst.msk [vmem:[%s2384_s29 + $0x94] sm:$0xf] %vm1402_vm0, %v1789_v13  ;;  %v852_v16 = vadd.f32 %v2375_v17, %v851_v14  ;;  %v980_v18 = vadd.f32 %v2375_v17, %v979_v15  ;;  %v853_v19 = vpop.f32.mrb[13].mxu0  ;;  %v981_v20 = vpop.f32.mrb[13].mxu1 }
 0x161   : > { %v854_v21 = vpop.f32.mrb[14].mxu0  ;;  %v982_v22 = vpop.f32.mrb[14].mxu1 }
 0x162   : > { %v1088_v23 = vmax.f32 %v852_v16, 0.0  ;;  %v1120_v24 = vmax.f32 %v980_v18, 0.0  ;;  %v855_v25 = vadd.f32 %v2375_v17, %v854_v21  ;;  %v983_v26 = vadd.f32 %v2375_v17, %v982_v22  ;;  %v856_v27 = vpop.f32.mrb[15].mxu0  ;;  %v984_v28 = vpop.f32.mrb[15].mxu1 }
 0x164   : > { %v1758_v29 = vpack.c.bf16 %v1088_v23, %v1088_v23  ;;  %v1790_v30 = vpack.c.bf16 %v1120_v24, %v1120_v24  ;;  %v1089_v31 = vmax.f32 %v855_v25, 0.0  ;;  %v1121_v32 = vmax.f32 %v983_v26, 0.0 }
 0x166   : > { %1409 = vst.msk [vmem:[%s2384_s29 + $0x18] sm:$0xf] %vm1402_vm0, %v1758_v29  ;;  %1441 = vst.msk [vmem:[%s2384_s29 + $0x98] sm:$0xf] %vm1402_vm0, %v1790_v30  ;;  %v1759_v33 = vpack.c.bf16 %v1089_v31, %v1089_v31  ;;  %v1791_v34 = vpack.c.bf16 %v1121_v32, %v1121_v32 }
 0x167   : > { %v859_v35 = vpop.f32.mrb[16].mxu0  ;;  %v987_v36 = vpop.f32.mrb[16].mxu1 }
 0x168   : > { %1410 = vst.msk [vmem:[%s2384_s29 + $0x1c] sm:$0xf] %vm1402_vm0, %v1759_v33  ;;  %1442 = vst.msk [vmem:[%s2384_s29 + $0x9c] sm:$0xf] %vm1402_vm0, %v1791_v34  ;;  %v860_v37 = vadd.f32 %v2375_v17, %v859_v35  ;;  %v988_v38 = vadd.f32 %v2375_v17, %v987_v36  ;;  %v861_v39 = vpop.f32.mrb[17].mxu0  ;;  %v989_v40 = vpop.f32.mrb[17].mxu1 }
 0x169   : > { %v862_v41 = vpop.f32.mrb[18].mxu0  ;;  %v990_v42 = vpop.f32.mrb[18].mxu1 }
 0x16a   : > { %v1090_v43 = vmax.f32 %v860_v37, 0.0  ;;  %v1122_v44 = vmax.f32 %v988_v38, 0.0  ;;  %v863_v45 = vadd.f32 %v2375_v17, %v862_v41  ;;  %v991_v46 = vadd.f32 %v2375_v17, %v990_v42  ;;  %v864_v47 = vpop.f32.mrb[19].mxu0  ;;  %v992_v48 = vpop.f32.mrb[19].mxu1 }
 0x16c   : > { %v1760_v49 = vpack.c.bf16 %v1090_v43, %v1090_v43  ;;  %v1792_v50 = vpack.c.bf16 %v1122_v44, %v1122_v44  ;;  %v1091_v51 = vmax.f32 %v863_v45, 0.0  ;;  %v1123_v52 = vmax.f32 %v991_v46, 0.0 }
 0x16e   : > { %1411 = vst.msk [vmem:[%s2384_s29 + $0x20] sm:$0xf] %vm1402_vm0, %v1760_v49  ;;  %1443 = vst.msk [vmem:[%s2384_s29 + $0xa0] sm:$0xf] %vm1402_vm0, %v1792_v50  ;;  %v1761_v53 = vpack.c.bf16 %v1091_v51, %v1091_v51  ;;  %v1793_v54 = vpack.c.bf16 %v1123_v52, %v1123_v52 }
 0x16f   : > { %v867_v55 = vpop.f32.mrb[20].mxu0  ;;  %v995_v56 = vpop.f32.mrb[20].mxu1 }
 0x170   : > { %1412 = vst.msk [vmem:[%s2384_s29 + $0x24] sm:$0xf] %vm1402_vm0, %v1761_v53  ;;  %1444 = vst.msk [vmem:[%s2384_s29 + $0xa4] sm:$0xf] %vm1402_vm0, %v1793_v54  ;;  %v868_v57 = vadd.f32 %v2375_v17, %v867_v55  ;;  %v996_v58 = vadd.f32 %v2375_v17, %v995_v56  ;;  %v869_v59 = vpop.f32.mrb[21].mxu0  ;;  %v997_v60 = vpop.f32.mrb[21].mxu1 }
 0x171   : > { %v870_v61 = vpop.f32.mrb[22].mxu0  ;;  %v998_v62 = vpop.f32.mrb[22].mxu1 }
 0x172   : > { %v1092_v63 = vmax.f32 %v868_v57, 0.0  ;;  %v1124_v0 = vmax.f32 %v996_v58, 0.0  ;;  %v871_v1 = vadd.f32 %v2375_v17, %v870_v61  ;;  %v999_v2 = vadd.f32 %v2375_v17, %v998_v62  ;;  %v872_v3 = vpop.f32.mrb[23].mxu0  ;;  %v1000_v4 = vpop.f32.mrb[23].mxu1 }
 0x174   : > { %v1762_v5 = vpack.c.bf16 %v1092_v63, %v1092_v63  ;;  %v1794_v6 = vpack.c.bf16 %v1124_v0, %v1124_v0  ;;  %v1093_v7 = vmax.f32 %v871_v1, 0.0  ;;  %v1125_v8 = vmax.f32 %v999_v2, 0.0 }
 0x176   : > { %1413 = vst.msk [vmem:[%s2384_s29 + $0x28] sm:$0xf] %vm1402_vm0, %v1762_v5  ;;  %1445 = vst.msk [vmem:[%s2384_s29 + $0xa8] sm:$0xf] %vm1402_vm0, %v1794_v6  ;;  %v1763_v9 = vpack.c.bf16 %v1093_v7, %v1093_v7  ;;  %v1795_v10 = vpack.c.bf16 %v1125_v8, %v1125_v8 }
 0x177   : > { %v875_v11 = vpop.f32.mrb[24].mxu0  ;;  %v1003_v12 = vpop.f32.mrb[24].mxu1 }
 0x178   : > { %1414 = vst.msk [vmem:[%s2384_s29 + $0x2c] sm:$0xf] %vm1402_vm0, %v1763_v9  ;;  %1446 = vst.msk [vmem:[%s2384_s29 + $0xac] sm:$0xf] %vm1402_vm0, %v1795_v10  ;;  %v876_v13 = vadd.f32 %v2375_v17, %v875_v11  ;;  %v1004_v14 = vadd.f32 %v2375_v17, %v1003_v12  ;;  %v877_v15 = vpop.f32.mrb[25].mxu0  ;;  %v1005_v16 = vpop.f32.mrb[25].mxu1 }
 0x179   : > { %v878_v18 = vpop.f32.mrb[26].mxu0  ;;  %v1006_v19 = vpop.f32.mrb[26].mxu1 }
 0x17a   : > { %v1094_v20 = vmax.f32 %v876_v13, 0.0  ;;  %v1126_v21 = vmax.f32 %v1004_v14, 0.0  ;;  %v879_v22 = vadd.f32 %v2375_v17, %v878_v18  ;;  %v1007_v23 = vadd.f32 %v2375_v17, %v1006_v19  ;;  %v880_v24 = vpop.f32.mrb[27].mxu0  ;;  %v1008_v25 = vpop.f32.mrb[27].mxu1 }
 0x17c   : > { %v1764_v26 = vpack.c.bf16 %v1094_v20, %v1094_v20  ;;  %v1796_v27 = vpack.c.bf16 %v1126_v21, %v1126_v21  ;;  %v1095_v28 = vmax.f32 %v879_v22, 0.0  ;;  %v1127_v29 = vmax.f32 %v1007_v23, 0.0 }
 0x17e   : > { %1415 = vst.msk [vmem:[%s2384_s29 + $0x30] sm:$0xf] %vm1402_vm0, %v1764_v26  ;;  %1447 = vst.msk [vmem:[%s2384_s29 + $0xb0] sm:$0xf] %vm1402_vm0, %v1796_v27  ;;  %v1765_v30 = vpack.c.bf16 %v1095_v28, %v1095_v28  ;;  %v1797_v31 = vpack.c.bf16 %v1127_v29, %v1127_v29 }
 0x17f   : > { %v883_v32 = vpop.f32.mrb[28].mxu0  ;;  %v1011_v33 = vpop.f32.mrb[28].mxu1 }
 0x180   : > { %1416 = vst.msk [vmem:[%s2384_s29 + $0x34] sm:$0xf] %vm1402_vm0, %v1765_v30  ;;  %1448 = vst.msk [vmem:[%s2384_s29 + $0xb4] sm:$0xf] %vm1402_vm0, %v1797_v31  ;;  %v884_v34 = vadd.f32 %v2375_v17, %v883_v32  ;;  %v1012_v35 = vadd.f32 %v2375_v17, %v1011_v33  ;;  %v885_v36 = vpop.f32.mrb[29].mxu0  ;;  %v1013_v37 = vpop.f32.mrb[29].mxu1 }
 0x181   : > { %v886_v38 = vpop.f32.mrb[30].mxu0  ;;  %v1014_v39 = vpop.f32.mrb[30].mxu1 }
 0x182   : > { %v1096_v40 = vmax.f32 %v884_v34, 0.0  ;;  %v1128_v41 = vmax.f32 %v1012_v35, 0.0  ;;  %v887_v42 = vadd.f32 %v2375_v17, %v886_v38  ;;  %v1015_v43 = vadd.f32 %v2375_v17, %v1014_v39  ;;  %v888_v44 = vpop.f32.mrb[31].mxu0  ;;  %v1016_v45 = vpop.f32.mrb[31].mxu1 }
 0x184   : > { %v1766_v46 = vpack.c.bf16 %v1096_v40, %v1096_v40  ;;  %v1798_v47 = vpack.c.bf16 %v1128_v41, %v1128_v41  ;;  %v1097_v48 = vmax.f32 %v887_v42, 0.0  ;;  %v1129_v49 = vmax.f32 %v1015_v43, 0.0 }
 0x186   : > { %1417 = vst.msk [vmem:[%s2384_s29 + $0x38] sm:$0xf] %vm1402_vm0, %v1766_v46  ;;  %1449 = vst.msk [vmem:[%s2384_s29 + $0xb8] sm:$0xf] %vm1402_vm0, %v1798_v47  ;;  %v1767_v50 = vpack.c.bf16 %v1097_v48, %v1097_v48  ;;  %v1799_v51 = vpack.c.bf16 %v1129_v49, %v1129_v49 }
 0x187   : > { %v891_v52 = vpop.f32.mrb[32].mxu0  ;;  %v1019_v53 = vpop.f32.mrb[32].mxu1 }
 0x188   : > { %1418 = vst.msk [vmem:[%s2384_s29 + $0x3c] sm:$0xf] %vm1402_vm0, %v1767_v50  ;;  %1450 = vst.msk [vmem:[%s2384_s29 + $0xbc] sm:$0xf] %vm1402_vm0, %v1799_v51  ;;  %v892_v54 = vadd.f32 %v2375_v17, %v891_v52  ;;  %v1020_v55 = vadd.f32 %v2375_v17, %v1019_v53  ;;  %v893_v56 = vpop.f32.mrb[33].mxu0  ;;  %v1021_v57 = vpop.f32.mrb[33].mxu1 }
 0x189   : > { %v894_v58 = vpop.f32.mrb[34].mxu0  ;;  %v1022_v59 = vpop.f32.mrb[34].mxu1 }
 0x18a   : > { %v1098_v60 = vmax.f32 %v892_v54, 0.0  ;;  %v1130_v61 = vmax.f32 %v1020_v55, 0.0  ;;  %v895_v62 = vadd.f32 %v2375_v17, %v894_v58  ;;  %v1023_v63 = vadd.f32 %v2375_v17, %v1022_v59  ;;  %v896_v0 = vpop.f32.mrb[35].mxu0  ;;  %v1024_v1 = vpop.f32.mrb[35].mxu1 }
 0x18c   : > { %v1768_v2 = vpack.c.bf16 %v1098_v60, %v1098_v60  ;;  %v1800_v3 = vpack.c.bf16 %v1130_v61, %v1130_v61  ;;  %v1099_v4 = vmax.f32 %v895_v62, 0.0  ;;  %v1131_v5 = vmax.f32 %v1023_v63, 0.0 }
 0x18e   : > { %1419 = vst.msk [vmem:[%s2384_s29 + $0x40] sm:$0xf] %vm1402_vm0, %v1768_v2  ;;  %1451 = vst.msk [vmem:[%s2384_s29 + $0xc0] sm:$0xf] %vm1402_vm0, %v1800_v3  ;;  %v1769_v6 = vpack.c.bf16 %v1099_v4, %v1099_v4  ;;  %v1801_v7 = vpack.c.bf16 %v1131_v5, %v1131_v5 }
 0x18f   : > { %v899_v8 = vpop.f32.mrb[36].mxu0  ;;  %v1027_v9 = vpop.f32.mrb[36].mxu1 }
 0x190   : > { %1420 = vst.msk [vmem:[%s2384_s29 + $0x44] sm:$0xf] %vm1402_vm0, %v1769_v6  ;;  %1452 = vst.msk [vmem:[%s2384_s29 + $0xc4] sm:$0xf] %vm1402_vm0, %v1801_v7  ;;  %v900_v10 = vadd.f32 %v2375_v17, %v899_v8  ;;  %v1028_v11 = vadd.f32 %v2375_v17, %v1027_v9  ;;  %v901_v12 = vpop.f32.mrb[37].mxu0  ;;  %v1029_v13 = vpop.f32.mrb[37].mxu1 }
 0x191   : > { %v902_v14 = vpop.f32.mrb[38].mxu0  ;;  %v1030_v15 = vpop.f32.mrb[38].mxu1 }
 0x192   : > { %v1100_v16 = vmax.f32 %v900_v10, 0.0  ;;  %v1132_v18 = vmax.f32 %v1028_v11, 0.0  ;;  %v903_v19 = vadd.f32 %v2375_v17, %v902_v14  ;;  %v1031_v20 = vadd.f32 %v2375_v17, %v1030_v15  ;;  %v904_v21 = vpop.f32.mrb[39].mxu0  ;;  %v1032_v22 = vpop.f32.mrb[39].mxu1 }
 0x194   : > { %v1770_v23 = vpack.c.bf16 %v1100_v16, %v1100_v16  ;;  %v1802_v24 = vpack.c.bf16 %v1132_v18, %v1132_v18  ;;  %v1101_v25 = vmax.f32 %v903_v19, 0.0  ;;  %v1133_v26 = vmax.f32 %v1031_v20, 0.0 }
 0x196   : > { %1421 = vst.msk [vmem:[%s2384_s29 + $0x48] sm:$0xf] %vm1402_vm0, %v1770_v23  ;;  %1453 = vst.msk [vmem:[%s2384_s29 + $0xc8] sm:$0xf] %vm1402_vm0, %v1802_v24  ;;  %v1771_v27 = vpack.c.bf16 %v1101_v25, %v1101_v25  ;;  %v1803_v28 = vpack.c.bf16 %v1133_v26, %v1133_v26 }
 0x197   : > { %v907_v29 = vpop.f32.mrb[40].mxu0  ;;  %v1035_v30 = vpop.f32.mrb[40].mxu1 }
 0x198   : > { %1422 = vst.msk [vmem:[%s2384_s29 + $0x4c] sm:$0xf] %vm1402_vm0, %v1771_v27  ;;  %1454 = vst.msk [vmem:[%s2384_s29 + $0xcc] sm:$0xf] %vm1402_vm0, %v1803_v28  ;;  %v908_v31 = vadd.f32 %v2375_v17, %v907_v29  ;;  %v1036_v32 = vadd.f32 %v2375_v17, %v1035_v30  ;;  %v909_v33 = vpop.f32.mrb[41].mxu0  ;;  %v1037_v34 = vpop.f32.mrb[41].mxu1 }
 0x199   : > { %v910_v35 = vpop.f32.mrb[42].mxu0  ;;  %v1038_v36 = vpop.f32.mrb[42].mxu1 }
 0x19a   : > { %v1102_v37 = vmax.f32 %v908_v31, 0.0  ;;  %v1134_v38 = vmax.f32 %v1036_v32, 0.0  ;;  %v911_v39 = vadd.f32 %v2375_v17, %v910_v35  ;;  %v1039_v40 = vadd.f32 %v2375_v17, %v1038_v36  ;;  %v912_v41 = vpop.f32.mrb[43].mxu0  ;;  %v1040_v42 = vpop.f32.mrb[43].mxu1 }
 0x19c   : > { %v1772_v43 = vpack.c.bf16 %v1102_v37, %v1102_v37  ;;  %v1804_v44 = vpack.c.bf16 %v1134_v38, %v1134_v38  ;;  %v1103_v45 = vmax.f32 %v911_v39, 0.0  ;;  %v1135_v46 = vmax.f32 %v1039_v40, 0.0 }
 0x19e   : > { %1423 = vst.msk [vmem:[%s2384_s29 + $0x50] sm:$0xf] %vm1402_vm0, %v1772_v43  ;;  %1455 = vst.msk [vmem:[%s2384_s29 + $0xd0] sm:$0xf] %vm1402_vm0, %v1804_v44  ;;  %v1773_v47 = vpack.c.bf16 %v1103_v45, %v1103_v45  ;;  %v1805_v48 = vpack.c.bf16 %v1135_v46, %v1135_v46 }
 0x19f   : > { %v915_v49 = vpop.f32.mrb[44].mxu0  ;;  %v1043_v50 = vpop.f32.mrb[44].mxu1 }
 0x1a0   : > { %1424 = vst.msk [vmem:[%s2384_s29 + $0x54] sm:$0xf] %vm1402_vm0, %v1773_v47  ;;  %1456 = vst.msk [vmem:[%s2384_s29 + $0xd4] sm:$0xf] %vm1402_vm0, %v1805_v48  ;;  %v916_v51 = vadd.f32 %v2375_v17, %v915_v49  ;;  %v1044_v52 = vadd.f32 %v2375_v17, %v1043_v50  ;;  %v917_v53 = vpop.f32.mrb[45].mxu0  ;;  %v1045_v54 = vpop.f32.mrb[45].mxu1 }
 0x1a1   : > { %v918_v55 = vpop.f32.mrb[46].mxu0  ;;  %v1046_v56 = vpop.f32.mrb[46].mxu1 }
 0x1a2   : > { %v1104_v57 = vmax.f32 %v916_v51, 0.0  ;;  %v1136_v58 = vmax.f32 %v1044_v52, 0.0  ;;  %v919_v59 = vadd.f32 %v2375_v17, %v918_v55  ;;  %v1047_v60 = vadd.f32 %v2375_v17, %v1046_v56  ;;  %v920_v61 = vpop.f32.mrb[47].mxu0  ;;  %v1048_v62 = vpop.f32.mrb[47].mxu1 }
 0x1a4   : > { %v1774_v63 = vpack.c.bf16 %v1104_v57, %v1104_v57  ;;  %v1806_v0 = vpack.c.bf16 %v1136_v58, %v1136_v58  ;;  %v1105_v1 = vmax.f32 %v919_v59, 0.0  ;;  %v1137_v2 = vmax.f32 %v1047_v60, 0.0 }
 0x1a6   : > { %1425 = vst.msk [vmem:[%s2384_s29 + $0x58] sm:$0xf] %vm1402_vm0, %v1774_v63  ;;  %1457 = vst.msk [vmem:[%s2384_s29 + $0xd8] sm:$0xf] %vm1402_vm0, %v1806_v0  ;;  %v1775_v3 = vpack.c.bf16 %v1105_v1, %v1105_v1  ;;  %v1807_v4 = vpack.c.bf16 %v1137_v2, %v1137_v2 }
 0x1a7   : > { %v923_v5 = vpop.f32.mrb[48].mxu0  ;;  %v1051_v6 = vpop.f32.mrb[48].mxu1 }
 0x1a8   : > { %1426 = vst.msk [vmem:[%s2384_s29 + $0x5c] sm:$0xf] %vm1402_vm0, %v1775_v3  ;;  %1458 = vst.msk [vmem:[%s2384_s29 + $0xdc] sm:$0xf] %vm1402_vm0, %v1807_v4  ;;  %v924_v7 = vadd.f32 %v2375_v17, %v923_v5  ;;  %v1052_v8 = vadd.f32 %v2375_v17, %v1051_v6  ;;  %v925_v9 = vpop.f32.mrb[49].mxu0  ;;  %v1053_v10 = vpop.f32.mrb[49].mxu1 }
 0x1a9   : > { %v926_v11 = vpop.f32.mrb[50].mxu0  ;;  %v1054_v12 = vpop.f32.mrb[50].mxu1 }
 0x1aa   : > { %v1106_v13 = vmax.f32 %v924_v7, 0.0  ;;  %v1138_v14 = vmax.f32 %v1052_v8, 0.0  ;;  %v927_v15 = vadd.f32 %v2375_v17, %v926_v11  ;;  %v1055_v16 = vadd.f32 %v2375_v17, %v1054_v12  ;;  %v928_v18 = vpop.f32.mrb[51].mxu0  ;;  %v1056_v19 = vpop.f32.mrb[51].mxu1 }
 0x1ac   : > { %v1776_v20 = vpack.c.bf16 %v1106_v13, %v1106_v13  ;;  %v1808_v21 = vpack.c.bf16 %v1138_v14, %v1138_v14  ;;  %v1107_v22 = vmax.f32 %v927_v15, 0.0  ;;  %v1139_v23 = vmax.f32 %v1055_v16, 0.0 }
 0x1ae   : > { %1427 = vst.msk [vmem:[%s2384_s29 + $0x60] sm:$0xf] %vm1402_vm0, %v1776_v20  ;;  %1459 = vst.msk [vmem:[%s2384_s29 + $0xe0] sm:$0xf] %vm1402_vm0, %v1808_v21  ;;  %v1777_v24 = vpack.c.bf16 %v1107_v22, %v1107_v22  ;;  %v1809_v25 = vpack.c.bf16 %v1139_v23, %v1139_v23 }
 0x1af   : > { %v931_v26 = vpop.f32.mrb[52].mxu0  ;;  %v1059_v27 = vpop.f32.mrb[52].mxu1 }
 0x1b0   : > { %1428 = vst.msk [vmem:[%s2384_s29 + $0x64] sm:$0xf] %vm1402_vm0, %v1777_v24  ;;  %1460 = vst.msk [vmem:[%s2384_s29 + $0xe4] sm:$0xf] %vm1402_vm0, %v1809_v25  ;;  %v932_v28 = vadd.f32 %v2375_v17, %v931_v26  ;;  %v1060_v29 = vadd.f32 %v2375_v17, %v1059_v27  ;;  %v933_v30 = vpop.f32.mrb[53].mxu0  ;;  %v1061_v31 = vpop.f32.mrb[53].mxu1 }
 0x1b1   : > { %v934_v32 = vpop.f32.mrb[54].mxu0  ;;  %v1062_v33 = vpop.f32.mrb[54].mxu1 }
 0x1b2   : > { %v1108_v34 = vmax.f32 %v932_v28, 0.0  ;;  %v1140_v35 = vmax.f32 %v1060_v29, 0.0  ;;  %v935_v36 = vadd.f32 %v2375_v17, %v934_v32  ;;  %v1063_v37 = vadd.f32 %v2375_v17, %v1062_v33  ;;  %v936_v38 = vpop.f32.mrb[55].mxu0  ;;  %v1064_v39 = vpop.f32.mrb[55].mxu1 }
 0x1b4   : > { %v1778_v40 = vpack.c.bf16 %v1108_v34, %v1108_v34  ;;  %v1810_v41 = vpack.c.bf16 %v1140_v35, %v1140_v35  ;;  %v1109_v42 = vmax.f32 %v935_v36, 0.0  ;;  %v1141_v43 = vmax.f32 %v1063_v37, 0.0 }
 0x1b6   : > { %1429 = vst.msk [vmem:[%s2384_s29 + $0x68] sm:$0xf] %vm1402_vm0, %v1778_v40  ;;  %1461 = vst.msk [vmem:[%s2384_s29 + $0xe8] sm:$0xf] %vm1402_vm0, %v1810_v41  ;;  %v1779_v44 = vpack.c.bf16 %v1109_v42, %v1109_v42  ;;  %v1811_v45 = vpack.c.bf16 %v1141_v43, %v1141_v43 }
 0x1b7   : > { %v939_v46 = vpop.f32.mrb[56].mxu0  ;;  %v1067_v47 = vpop.f32.mrb[56].mxu1 }
 0x1b8   : > { %1430 = vst.msk [vmem:[%s2384_s29 + $0x6c] sm:$0xf] %vm1402_vm0, %v1779_v44  ;;  %1462 = vst.msk [vmem:[%s2384_s29 + $0xec] sm:$0xf] %vm1402_vm0, %v1811_v45  ;;  %v940_v48 = vadd.f32 %v2375_v17, %v939_v46  ;;  %v1068_v49 = vadd.f32 %v2375_v17, %v1067_v47  ;;  %v941_v50 = vpop.f32.mrb[57].mxu0  ;;  %v1069_v51 = vpop.f32.mrb[57].mxu1 }
 0x1b9   : > { %v942_v52 = vpop.f32.mrb[58].mxu0  ;;  %v1070_v53 = vpop.f32.mrb[58].mxu1 }
 0x1ba   : > { %v1110_v54 = vmax.f32 %v940_v48, 0.0  ;;  %v1142_v55 = vmax.f32 %v1068_v49, 0.0  ;;  %v943_v56 = vadd.f32 %v2375_v17, %v942_v52  ;;  %v1071_v57 = vadd.f32 %v2375_v17, %v1070_v53  ;;  %v944_v58 = vpop.f32.mrb[59].mxu0  ;;  %v1072_v59 = vpop.f32.mrb[59].mxu1 }
 0x1bc   : > { %v1780_v60 = vpack.c.bf16 %v1110_v54, %v1110_v54  ;;  %v1812_v61 = vpack.c.bf16 %v1142_v55, %v1142_v55  ;;  %v1111_v62 = vmax.f32 %v943_v56, 0.0  ;;  %v1143_v63 = vmax.f32 %v1071_v57, 0.0 }
 0x1be   : > { %1431 = vst.msk [vmem:[%s2384_s29 + $0x70] sm:$0xf] %vm1402_vm0, %v1780_v60  ;;  %1463 = vst.msk [vmem:[%s2384_s29 + $0xf0] sm:$0xf] %vm1402_vm0, %v1812_v61  ;;  %v1781_v0 = vpack.c.bf16 %v1111_v62, %v1111_v62  ;;  %v1813_v1 = vpack.c.bf16 %v1143_v63, %v1143_v63 }
 0x1bf   : > { %v947_v2 = vpop.f32.mrb[60].mxu0  ;;  %v1075_v3 = vpop.f32.mrb[60].mxu1 }
 0x1c0   : > { %1432 = vst.msk [vmem:[%s2384_s29 + $0x74] sm:$0xf] %vm1402_vm0, %v1781_v0  ;;  %1464 = vst.msk [vmem:[%s2384_s29 + $0xf4] sm:$0xf] %vm1402_vm0, %v1813_v1  ;;  %v948_v4 = vadd.f32 %v2375_v17, %v947_v2  ;;  %v1076_v5 = vadd.f32 %v2375_v17, %v1075_v3  ;;  %v949_v6 = vpop.f32.mrb[61].mxu0  ;;  %v1077_v7 = vpop.f32.mrb[61].mxu1 }
 0x1c1   : > { %v950_v8 = vpop.f32.mrb[62].mxu0  ;;  %v1078_v9 = vpop.f32.mrb[62].mxu1 }
 0x1c2   : > { %v1112_v10 = vmax.f32 %v948_v4, 0.0  ;;  %v1144_v11 = vmax.f32 %v1076_v5, 0.0  ;;  %v951_v12 = vadd.f32 %v2375_v17, %v950_v8  ;;  %v1079_v13 = vadd.f32 %v2375_v17, %v1078_v9  ;;  %v952_v14 = vpop.f32.mrb[63].mxu0  ;;  %v1080_v15 = vpop.f32.mrb[63].mxu1 }
 0x1c4   : > { %v1782_v16 = vpack.c.bf16 %v1112_v10, %v1112_v10  ;;  %v1814_v18 = vpack.c.bf16 %v1144_v11, %v1144_v11  ;;  %v1113_v19 = vmax.f32 %v951_v12, 0.0  ;;  %v1145_v20 = vmax.f32 %v1079_v13, 0.0 }
 0x1c6   : > { %1433 = vst.msk [vmem:[%s2384_s29 + $0x78] sm:$0xf] %vm1402_vm0, %v1782_v16  ;;  %1465 = vst.msk [vmem:[%s2384_s29 + $0xf8] sm:$0xf] %vm1402_vm0, %v1814_v18  ;;  %v1783_v21 = vpack.c.bf16 %v1113_v19, %v1113_v19  ;;  %v1815_v22 = vpack.c.bf16 %v1145_v20, %v1145_v20 }
 0x1c8   : > { %1434 = vst.msk [vmem:[%s2384_s29 + $0x7c] sm:$0xf] %vm1402_vm0, %v1783_v21  ;;  %1466 = vst.msk [vmem:[%s2384_s29 + $0xfc] sm:$0xf] %vm1402_vm0, %v1815_v22 }
 0x1c9 PF: > { %s16_s17 = sadd.s32 1, %s2098_s17   ;;  %s2599_s12 = smov %s2082_s13 }
 0x1ca   : > { %p13_p9 = scmp.ge.s32.totalorder %s16_s17, 6   ;;  %s2600_s13 = smov %s2086_s14 }
 0x1cb   : > { %s2601_s14 = smov %s2173_s24  ;;  %s2602_s15 = smov %s2094_s16 }
 0x1cc   : > { %s2603_s16 = smov %s2605_s19  ;;  %15 = sbr.rel (!%p13_p9) target bundleno = 4 (0x4), region = 78 }
 0x1d3   :  { %1495 = vsyncpa [#allocation3], 1 }
 0x1d4   :  { %1497 = vsyncpa [#allocation3 + $0x1], 1 }

</bundles_post_ra>
